<compile_context>
chip_gen: v5e
topology: v5e:2x2
jax: 0.10.0
libtpu: 0.0.40
codegen_flags: <defaults>
</compile_context>

<pallas_src>
import functools

import jax
import jax.numpy as jnp
from jax import lax
from jax.experimental import pallas as pl
from jax.experimental.pallas import tpu as pltpu


_NEG_BIG = -1e30  # finite "-inf" used to mask padded vocab columns


def _round_up(x, m):
    return (x + m - 1) // m * m


def _vmem_capacity_bytes():
    try:
        return int(pltpu.get_tpu_info().vmem_capacity_bytes)
    except Exception:
        return 64 << 20  # conservative fallback (v7x per-core VMEM)


def _mlm_kernel(x_ref, w_ref, b_ref, o_ref, m_sc, l_sc, *, tv, v_actual, nj, precision):
    # x_ref: (tm, H) compute_dtype   w_ref: (H, tv) compute_dtype   b_ref: (1, tv) f32
    # o_ref: (tm, V) out_dtype  -- resident across the vocab grid axis (block index (i, 0))
    # m_sc, l_sc: (tm, 1) f32 running max / running sum-exp
    j = pl.program_id(1)

    @pl.when(j == 0)
    def _():
        m_sc[...] = jnp.full_like(m_sc, _NEG_BIG)
        l_sc[...] = jnp.zeros_like(l_sc)

    # Inputs are already in compute_dtype (pre-cast in the wrapper) -> no per-step casts.
    logits = jnp.dot(x_ref[...], w_ref[...],
                     preferred_element_type=jnp.float32, precision=precision)
    logits = logits + b_ref[...]                      # (1, tv) f32 broadcast over rows

    tail = v_actual - (nj - 1) * tv                   # valid columns of the last vocab tile

    # Mask padded vocab columns (only the last tile can have them) before max / sum-exp.
    if tail < tv:
        col = lax.broadcasted_iota(jnp.int32, logits.shape, 1)
        masked = jnp.where(jnp.logical_or(j < nj - 1, col < tail), logits, _NEG_BIG)
    else:
        masked = logits

    # Online (flash-style) running max / sum-exp over the vocab axis.
    # TODO(synk): on v6e/v7x run the exp in bf16 (f32 accumulation) when H is small (<~256)
    #             to offload the EUP; v5e's EUP has no bf16, keep f32 there.
    m_prev = m_sc[...]
    m_new = jnp.maximum(m_prev, jnp.max(masked, axis=-1, keepdims=True))
    l_sc[...] = (l_sc[...] * jnp.exp(m_prev - m_new)
                 + jnp.sum(jnp.exp(masked - m_new), axis=-1, keepdims=True))
    m_sc[...] = m_new

    # Stash raw logits into this vocab tile's slice of the resident (tm, V) output block.
    # Padded columns are never written, so the output needs no post-kernel vocab slice.
    if tail < tv:
        if nj > 1:
            @pl.when(j < nj - 1)
            def _():
                start = pl.multiple_of(j * tv, tv)
                o_ref[:, pl.ds(start, tv)] = logits.astype(o_ref.dtype)

        @pl.when(j == nj - 1)
        def _():
            lo = (nj - 1) * tv
            o_ref[:, lo:lo + tail] = logits[:, :tail].astype(o_ref.dtype)
    else:
        start = pl.multiple_of(j * tv, tv)
        o_ref[:, pl.ds(start, tv)] = logits.astype(o_ref.dtype)

    # Last vocab step: log_softmax = logits - (max + log(sum_exp)); normalize the row block.
    @pl.when(j == nj - 1)
    def _():
        norm = m_sc[...] + jnp.log(l_sc[...])
        o_ref[...] = (o_ref[...].astype(jnp.float32) - norm).astype(o_ref.dtype)


@functools.partial(jax.jit,
                   static_argnames=("tm", "tv", "compute_dtype", "out_dtype", "precision"))
def masked_language_model(x, w, b, *, tm=256, tv=1024,
                          compute_dtype=jnp.bfloat16, out_dtype=jnp.float32,
                          precision=None):
    """Linear(hidden -> vocab) + LogSoftmax(dim=-1).

    x: [B, S, H]; w: [H, V] (transpose of nn.Linear weight [V, H]); b: [V].
    Returns log-probabilities [B, S, V] in out_dtype.

    Tuning guidance:
      tm (row tile):   v5e 256; v6e 384-512 with out_dtype=bfloat16; v7x 256 with
                       out_dtype=bfloat16 (or 128 with f32).  tm is auto-shrunk so the
                       double-buffered resident (tm, V) stash fits the chip's VMEM.
      tv (vocab tile): 1024-2048 (multiple of 128) amortizes per-grid-step overhead.
      compute_dtype:   bfloat16 = fast MXU path (DEFAULT precision, f32 accumulation);
                       float32 = exact path (HIGHEST precision; ~6x MXU passes).
      out_dtype:       bfloat16 halves the resident stash / HBM writeback, at the cost of
                       bf16-rounded raw logits before normalization (~2-3 decimal digits).
    """
    B, S, H = x.shape
    V = w.shape[1]
    M = B * S

    if precision is None:
        precision = (lax.Precision.HIGHEST
                     if jnp.dtype(compute_dtype) == jnp.dtype(jnp.float32)
                     else lax.Precision.DEFAULT)

    in_itemsize = jnp.dtype(compute_dtype).itemsize
    out_itemsize = jnp.dtype(out_dtype).itemsize

    # Effective tiles: rows to a multiple of 8, vocab tile to a multiple of 128
    # (TPU (8,128) block constraint); do not over-pad tiny problems.
    tm_eff = min(tm, _round_up(M, 8))
    tv_eff = min(tv, _round_up(V, 128))

    # Double-buffered resident output row block + input tiles + scratch must fit VMEM
    # (v5e/v6e: 128 MiB, v7x: 64 MiB).  Auto-shrink tm until it fits.
    vmem_cap = _vmem_capacity_bytes()
    lane_v = _round_up(V, 128)

    def footprint(tm_):
        in_bytes = 2 * (tm_ * H * in_itemsize          # x row block
                        + H * tv_eff * in_itemsize     # weight vocab tile
                        + 8 * tv_eff * 4)              # bias tile (sublane-padded)
        out_bytes = 2 * tm_ * lane_v * out_itemsize    # resident (tm, V) stash
        scratch_bytes = 2 * tm_ * 128 * 4              # (tm, 1) f32 scratch x2, lane-padded
        return in_bytes + out_bytes + scratch_bytes

    while tm_eff > 8 and footprint(tm_eff) > int(0.85 * vmem_cap):
        tm_eff = max(8, _round_up(tm_eff // 2, 8))

    Mp = _round_up(M, tm_eff)
    Vp = _round_up(V, tv_eff)
    nj = Vp // tv_eff

    # Pre-cast to the MXU compute dtype in the wrapper: halves the dominant HBM weight
    # stream and removes per-step casts in the kernel.
    x2d = x.reshape(M, H).astype(compute_dtype)
    if Mp != M:
        x2d = jnp.pad(x2d, ((0, Mp - M), (0, 0)))
    wp = w.astype(compute_dtype)
    if Vp != V:
        wp = jnp.pad(wp, ((0, 0), (0, Vp - V)))
    bp = (jnp.pad(b, (0, Vp - V)) if Vp != V else b).astype(jnp.float32).reshape(1, Vp)

    grid = (Mp // tm_eff, nj)
    kernel = functools.partial(_mlm_kernel, tv=tv_eff, v_actual=V, nj=nj,
                               precision=precision)

    n_row_blocks = Mp // tm_eff
    cost = pl.CostEstimate(
        flops=2 * M * H * V,
        transcendentals=M * V,
        bytes_accessed=int(x2d.size * in_itemsize
                           + n_row_blocks * (wp.size * in_itemsize + bp.size * 4)
                           + Mp * V * out_itemsize),
    )

    vmem_limit = int(min(max(footprint(tm_eff) + (8 << 20), 32 << 20),
                         vmem_cap, 128 << 20))

    # TODO(synk): on v7x, if profiling shows the chip HBM-bound, shard the vocab axis across
    # the two TCs and combine the (m, l) partials via VMEM_SHARED so the weight is streamed
    # once per chip instead of once per core (row-parallel megacore re-streams it twice).
    out = pl.pallas_call(
        kernel,
        out_shape=jax.ShapeDtypeStruct((Mp, V), out_dtype),
        grid_spec=pltpu.PrefetchScalarGridSpec(
            num_scalar_prefetch=0,
            grid=grid,
            in_specs=[
                pl.BlockSpec((tm_eff, H), lambda i, j: (i, 0)),   # x rows (reused over j)
                pl.BlockSpec((H, tv_eff), lambda i, j: (0, j)),   # streamed weight vocab tile
                pl.BlockSpec((1, tv_eff), lambda i, j: (0, j)),   # bias vocab tile
            ],
            out_specs=pl.BlockSpec((tm_eff, V), lambda i, j: (i, 0)),  # resident row block
            scratch_shapes=[
                pltpu.VMEM((tm_eff, 1), jnp.float32),   # running max
                pltpu.VMEM((tm_eff, 1), jnp.float32),   # running sum-exp
            ],
        ),
        compiler_params=pltpu.CompilerParams(
            dimension_semantics=("parallel", "arbitrary"),
            vmem_limit_bytes=vmem_limit,
        ),
        cost_estimate=cost,
    )(x2d, wp, bp)

    if Mp != M:
        out = out[:M]                 # row padding only; vocab is already exact-width
    return out.reshape(B, S, V)


def reference(x, w, b, compute_dtype=jnp.float32):
    H = x.shape[-1]
    logits = jnp.dot(x.astype(compute_dtype).reshape(-1, H),
                     w.astype(compute_dtype),
                     preferred_element_type=jnp.float32,
                     precision=lax.Precision.HIGHEST) + b.astype(jnp.float32)
    logp = jax.nn.log_softmax(logits, axis=-1)
    return logp.reshape(*x.shape[:-1], w.shape[1])


if __name__ == "__main__":
    # Small shapes consistent with the module: hidden=32, vocab=300 (non-multiple of 128
    # to exercise the ragged-last-vocab-tile path).
    B, S, H, V = 2, 8, 32, 300

    key = jax.random.PRNGKey(0)
    kx, kw, kb = jax.random.split(key, 3)
    x = jax.random.normal(kx, (B, S, H), dtype=jnp.float32)
    # nn.Linear(hidden, vocab) has weight [V, H]; we keep the transpose [H, V].
    w = jax.random.normal(kw, (H, V), dtype=jnp.float32) * (1.0 / jnp.sqrt(H))
    b = jax.random.normal(kb, (V,), dtype=jnp.float32) * 0.01

    # 1) Exact f32 path (default tiles; single vocab tile 300 -> 384) vs. pure-JAX reference.
    out_f32 = jax.block_until_ready(
        masked_language_model(x, w, b, compute_dtype=jnp.float32))
    ref_f32 = reference(x, w, b, compute_dtype=jnp.float32)
    assert out_f32.shape == (B, S, V)
    assert jnp.allclose(out_f32, ref_f32, atol=1e-5, rtol=1e-5)

    # 2) bf16-MXU path with small tiles to exercise the multi-tile online softmax and the
    #    ragged last vocab tile (V=300, tv=128 -> 2 full tiles + a 44-wide tail; tm=8 -> 2 row blocks).
    out_bf = jax.block_until_ready(
        masked_language_model(x, w, b, tm=8, tv=128, compute_dtype=jnp.bfloat16))
    ref_bf = reference(x, w, b, compute_dtype=jnp.bfloat16)
    assert jnp.allclose(out_bf, ref_bf, atol=1e-4, rtol=1e-4)

    print("KERNEL_OK")
</pallas_src>

<mosaic_0001>
module attributes {stable_mosaic.version = 11 : i64} {
  func.func @_mlm_kernel(%arg0: i32, %arg1: i32, %arg2: memref<16x32xf32, #tpu.memory_space<vmem>>, %arg3: memref<32x384xf32, #tpu.memory_space<vmem>>, %arg4: memref<1x384xf32, #tpu.memory_space<vmem>>, %arg5: memref<16x300xf32, #tpu.memory_space<vmem>>, %arg6: memref<16x1xf32, #tpu.memory_space<vmem>>, %arg7: memref<16x1xf32, #tpu.memory_space<vmem>>) attributes {dimension_semantics = [#tpu.dimension_semantics<parallel>, #tpu.dimension_semantics<arbitrary>], iteration_bounds = array<i64: 1, 1>, scalar_prefetch = 0 : i64, scratch_operands = 2 : i64, tpu.core_type = #tpu.core_type<tc>, window_params = [{transform_indices = @transform_0, window_bounds = array<i64: 16, 32>}, {transform_indices = @transform_1, window_bounds = array<i64: 32, 384>}, {transform_indices = @transform_2, window_bounds = array<i64: 1, 384>}, {transform_indices = @transform_3, window_bounds = array<i64: 16, 300>}]} {
    %c0_i32 = arith.constant 0 : i32
    %0 = arith.cmpi eq, %arg1, %c0_i32 : i32
    %1 = arith.extui %0 : i1 to i32
    %c0_i32_0 = arith.constant 0 : i32
    %2 = arith.cmpi ne, %1, %c0_i32_0 : i32
    scf.if %2 {
      %cst_22 = arith.constant -1.000000e+30 : f32
      %39 = vector.broadcast %cst_22 : f32 to vector<16x1xf32>
      %c0_23 = arith.constant 0 : index
      %c0_24 = arith.constant 0 : index
      %40 = vector.load %arg6[%c0_23, %c0_24] : memref<16x1xf32, #tpu.memory_space<vmem>>, vector<16x1xf32>
      tpu.vector_store %arg6[%c0_23, %c0_24], %39 {strides = array<i32>} : memref<16x1xf32, #tpu.memory_space<vmem>>, vector<16x1xf32>,
      %cst_25 = arith.constant 0.000000e+00 : f32
      %41 = vector.broadcast %cst_25 : f32 to vector<16x1xf32>
      %c0_26 = arith.constant 0 : index
      %c0_27 = arith.constant 0 : index
      %42 = vector.load %arg7[%c0_26, %c0_27] : memref<16x1xf32, #tpu.memory_space<vmem>>, vector<16x1xf32>
      tpu.vector_store %arg7[%c0_26, %c0_27], %41 {strides = array<i32>} : memref<16x1xf32, #tpu.memory_space<vmem>>, vector<16x1xf32>,
    } else {
    }
    %c0 = arith.constant 0 : index
    %c0_1 = arith.constant 0 : index
    %3 = vector.load %arg2[%c0, %c0_1] : memref<16x32xf32, #tpu.memory_space<vmem>>, vector<16x32xf32>
    %c0_2 = arith.constant 0 : index
    %c0_3 = arith.constant 0 : index
    %4 = vector.load %arg3[%c0_2, %c0_3] : memref<32x384xf32, #tpu.memory_space<vmem>>, vector<32x384xf32>
    %cst = arith.constant dense<0.000000e+00> : vector<16x384xf32>
    %5 = tpu.matmul %3, %4, %cst {dimension_numbers = #tpu.dot_dimension_numbers<[1], [0], [0], [1], [0, 0, 1, 1], [], []>, precision = #tpu.contract_precision<fp32>} : vector<16x32xf32>, vector<32x384xf32>, vector<16x384xf32> -> vector<16x384xf32>
    %c0_4 = arith.constant 0 : index
    %c0_5 = arith.constant 0 : index
    %6 = vector.load %arg4[%c0_4, %c0_5] : memref<1x384xf32, #tpu.memory_space<vmem>>, vector<1x384xf32>
    %7 = vector.broadcast %6 : vector<1x384xf32> to vector<16x384xf32>
    %8 = arith.addf %5, %7 : vector<16x384xf32>
    %9 = tpu.iota {dimensions = array<i32: 1>} : vector<16x384xi32>
    %c0_i32_6 = arith.constant 0 : i32
    %10 = arith.cmpi slt, %arg1, %c0_i32_6 : i32
    %c300_i32 = arith.constant 300 : i32
    %11 = vector.broadcast %c300_i32 : i32 to vector<16x384xi32>
    %12 = arith.cmpi slt, %9, %11 : vector<16x384xi32>
    %13 = vector.broadcast %10 : i1 to vector<16x384xi1>
    %14 = arith.ori %13, %12 : vector<16x384xi1>
    %cst_7 = arith.constant -1.000000e+30 : f32
    %15 = vector.broadcast %cst_7 : f32 to vector<16x384xf32>
    %16 = arith.select %14, %8, %15 : vector<16x384xi1>, vector<16x384xf32>
    %c0_8 = arith.constant 0 : index
    %c0_9 = arith.constant 0 : index
    %17 = vector.load %arg6[%c0_8, %c0_9] : memref<16x1xf32, #tpu.memory_space<vmem>>, vector<16x1xf32>
    %cst_10 = arith.constant dense<0xFF800000> : vector<16xf32>
    %18 = vector.multi_reduction <maximumf>, %16, %cst_10 [1] : vector<16x384xf32> to vector<16xf32>
    %19 = vector.shape_cast %18 : vector<16xf32> to vector<16x1xf32>
    %20 = arith.maximumf %17, %19 : vector<16x1xf32>
    %c0_11 = arith.constant 0 : index
    %c0_12 = arith.constant 0 : index
    %21 = vector.load %arg7[%c0_11, %c0_12] : memref<16x1xf32, #tpu.memory_space<vmem>>, vector<16x1xf32>
    %22 = arith.subf %17, %20 : vector<16x1xf32>
    %23 = math.exp %22 : vector<16x1xf32>
    %24 = arith.mulf %21, %23 : vector<16x1xf32>
    %25 = vector.broadcast %20 : vector<16x1xf32> to vector<16x384xf32>
    %26 = arith.subf %16, %25 : vector<16x384xf32>
    %27 = math.exp %26 : vector<16x384xf32>
    %cst_13 = arith.constant dense<0.000000e+00> : vector<16xf32>
    %28 = vector.multi_reduction <add>, %27, %cst_13 [1] : vector<16x384xf32> to vector<16xf32>
    %29 = vector.shape_cast %28 : vector<16xf32> to vector<16x1xf32>
    %30 = arith.addf %24, %29 : vector<16x1xf32>
    %c0_14 = arith.constant 0 : index
    %c0_15 = arith.constant 0 : index
    %31 = vector.load %arg7[%c0_14, %c0_15] : memref<16x1xf32, #tpu.memory_space<vmem>>, vector<16x1xf32>
    tpu.vector_store %arg7[%c0_14, %c0_15], %30 {strides = array<i32>} : memref<16x1xf32, #tpu.memory_space<vmem>>, vector<16x1xf32>,
    %c0_16 = arith.constant 0 : index
    %c0_17 = arith.constant 0 : index
    %32 = vector.load %arg6[%c0_16, %c0_17] : memref<16x1xf32, #tpu.memory_space<vmem>>, vector<16x1xf32>
    tpu.vector_store %arg6[%c0_16, %c0_17], %20 {strides = array<i32>} : memref<16x1xf32, #tpu.memory_space<vmem>>, vector<16x1xf32>,
    %c0_i32_18 = arith.constant 0 : i32
    %33 = arith.cmpi eq, %arg1, %c0_i32_18 : i32
    %34 = arith.extui %33 : i1 to i32
    %c0_i32_19 = arith.constant 0 : i32
    %35 = arith.cmpi ne, %34, %c0_i32_19 : i32
    scf.if %35 {
      %39 = vector.extract_strided_slice %8 {offsets = [0, 0], sizes = [16, 300], strides = [1, 1]} : vector<16x384xf32> to vector<16x300xf32>
      %c0_22 = arith.constant 0 : index
      %c0_23 = arith.constant 0 : index
      %40 = vector.load %arg5[%c0_22, %c0_23] : memref<16x300xf32, #tpu.memory_space<vmem>>, vector<16x300xf32>
      tpu.vector_store %arg5[%c0_22, %c0_23], %39 {strides = array<i32>} : memref<16x300xf32, #tpu.memory_space<vmem>>, vector<16x300xf32>,
    } else {
    }
    %c0_i32_20 = arith.constant 0 : i32
    %36 = arith.cmpi eq, %arg1, %c0_i32_20 : i32
    %37 = arith.extui %36 : i1 to i32
    %c0_i32_21 = arith.constant 0 : i32
    %38 = arith.cmpi ne, %37, %c0_i32_21 : i32
    scf.if %38 {
      %c0_22 = arith.constant 0 : index
      %c0_23 = arith.constant 0 : index
      %39 = vector.load %arg6[%c0_22, %c0_23] : memref<16x1xf32, #tpu.memory_space<vmem>>, vector<16x1xf32>
      %c0_24 = arith.constant 0 : index
      %c0_25 = arith.constant 0 : index
      %40 = vector.load %arg7[%c0_24, %c0_25] : memref<16x1xf32, #tpu.memory_space<vmem>>, vector<16x1xf32>
      %41 = math.log %40 : vector<16x1xf32>
      %42 = arith.addf %39, %41 : vector<16x1xf32>
      %c0_26 = arith.constant 0 : index
      %c0_27 = arith.constant 0 : index
      %43 = vector.load %arg5[%c0_26, %c0_27] : memref<16x300xf32, #tpu.memory_space<vmem>>, vector<16x300xf32>
      %44 = vector.broadcast %42 : vector<16x1xf32> to vector<16x300xf32>
      %45 = arith.subf %43, %44 : vector<16x300xf32>
      %c0_28 = arith.constant 0 : index
      %c0_29 = arith.constant 0 : index
      %46 = vector.load %arg5[%c0_28, %c0_29] : memref<16x300xf32, #tpu.memory_space<vmem>>, vector<16x300xf32>
      tpu.vector_store %arg5[%c0_28, %c0_29], %45 {strides = array<i32>} : memref<16x300xf32, #tpu.memory_space<vmem>>, vector<16x300xf32>,
    } else {
    }
    return
  }
  func.func @transform_0(%arg0: i32, %arg1: i32) -> (i32, i32) {
    %c0_i32 = arith.constant 0 : i32
    %c0_i32_0 = arith.constant 0 : i32
    return %arg0, %c0_i32 : i32, i32
  }
  func.func @transform_1(%arg0: i32, %arg1: i32) -> (i32, i32) {
    %c0_i32 = arith.constant 0 : i32
    %c0_i32_0 = arith.constant 0 : i32
    return %c0_i32, %arg1 : i32, i32
  }
  func.func @transform_2(%arg0: i32, %arg1: i32) -> (i32, i32) {
    %c0_i32 = arith.constant 0 : i32
    %c0_i32_0 = arith.constant 0 : i32
    return %c0_i32, %arg1 : i32, i32
  }
  func.func @transform_3(%arg0: i32, %arg1: i32) -> (i32, i32) {
    %c0_i32 = arith.constant 0 : i32
    %c0_i32_0 = arith.constant 0 : i32
    return %arg0, %c0_i32 : i32, i32
  }
}

</mosaic_0001>

<bundles_post_ra>
// kernel: masked_language_model.1
= control target key start
LH: loop header
LB: loop body
LE: loop exit
PB: predicated region body
PF: predicated region fallthrough
CT: control target
= control target key end

     0   :  { %vm46_vm0 = vcmask 261120   ;;  %s1216_s0 = inlined_call_operand.vmem [shape: f32[16,32], index: 0, kind: input, shape index: {}]   ;;  %s1217_s1 = inlined_call_operand.vmem [shape: f32[32,384], index: 1, kind: input, shape index: {}]   ;;  %s1218_s2 = inlined_call_operand.vmem [shape: f32[1,384], index: 2, kind: input, shape index: {}]   ;;  %s1219_s3 = inlined_call_operand.hbm [shape: f32[16,300], index: 3, kind: output, shape index: {}]  }
   0x1   :  { %v35_v0 = vld [vmem:[%s1217_s1 + $0x48] sm:$0xff]  ;;  %v32_v1 = vld [vmem:[%s1217_s1 + $0x30] sm:$0xff]  ;;  %v29_v2 = vld [vmem:[%s1217_s1 + $0x18] sm:$0xff] }
   0x2   :  { %v949_v3 = vand.u32 4294901760, %v35_v0  ;;  %v951_v4 = vand.u32 4294901760, %v32_v1  ;;  %v953_v5 = vand.u32 4294901760, %v29_v2  ;;  %v26_v6 = vld [vmem:[%s1217_s1] sm:$0xff]  ;;  %v25_v7 = vld [vmem:[%s1216_s0 + $0x8] sm:$0xff]  ;;  %v36_v16 = vld [vmem:[%s1217_s1 + $0x50] sm:$0xff] }
   0x3   :  { %v24_v8 = vld [vmem:[%s1216_s0] sm:$0xff]  ;;  %v964_v9 = vand.u32 4294901760, %v26_v6  ;;  %v51_v10 = vsel %vm46_vm0, %v25_v7, 0 }
   0x4   :  { %v48_v11 = vsel %vm46_vm0, %v24_v8, 0  ;;  %852 = vmatpush.msra.mxu2 %v949_v3  ;;  %v103_v12 = vsub.f32 %v35_v0, %v949_v3  ;;  %v968_v13 = vand.u32 4294901760, %v51_v10  ;;  %v109_v14 = vsub.f32 %v32_v1, %v951_v4  ;;  %66 = vmatpush.msra.mxu0 %v949_v3 }
   0x5   :  { %v972_v15 = vsub.f32 %v29_v2, %v953_v5 }
   0x6   :  { %8 = vsyncpa [#allocation5], 0  ;;  %v979_v17 = vsub.f32 %v26_v6, %v964_v9  ;;  %v981_v18 = vand.u32 4294901760, %v48_v11  ;;  %853 = vmatpush.msra.mxu2 %v951_v4  ;;  %v104_v19 = vand.u32 4294901760, %v103_v12  ;;  %v985_v20 = vsub.f32 %v51_v10, %v968_v13  ;;  %68 = vmatpush.msra.mxu0 %v951_v4  ;;  %v33_v23 = vld [vmem:[%s1217_s1 + $0x38] sm:$0xff]  ;;  %v30_v33 = vld [vmem:[%s1217_s1 + $0x20] sm:$0xff] }
   0x7   :  { %v110_v21 = vand.u32 4294901760, %v109_v14  ;;  %v116_v22 = vand.u32 4294901760, %v972_v15  ;;  %v996_v26 = vand.u32 4294901760, %v36_v16  ;;  %v1009_v32 = vand.u32 4294901760, %v33_v23  ;;  %v27_v39 = vld [vmem:[%s1217_s1 + $0x8] sm:$0xff]  ;;  %v37_v52 = vld [vmem:[%s1217_s1 + $0x58] sm:$0xff] }
   0x8   :  { %v122_v24 = vand.u32 4294901760, %v979_v17  ;;  %v994_v25 = vsub.f32 %v48_v11, %v981_v18  ;;  %854 = vmatpush.msra.mxu2 %v953_v5  ;;  %v105_v27 = vsub.f32 %v103_v12, %v104_v19  ;;  %v1000_v28 = vand.u32 4294901760, %v985_v20  ;;  %70 = vmatpush.msra.mxu0 %v953_v5  ;;  %v34_v58 = vld [vmem:[%s1217_s1 + $0x40] sm:$0xff]  ;;  %v31_v62 = vld [vmem:[%s1217_s1 + $0x28] sm:$0xff]  ;;  %v28_v2 = vld [vmem:[%s1217_s1 + $0x10] sm:$0xff]  ;;  %s840_s16 = sshll.u32 %s1219_s3, 4  ;;  %s841_s16 = int_to_ptr.hbm [resolvable:$true] %s840_s16 }
   0x9   :  { %v111_v29 = vsub.f32 %v109_v14, %v110_v21  ;;  %v117_v30 = vsub.f32 %v972_v15, %v116_v22  ;;  %v1029_v42 = vsub.f32 %v36_v16, %v996_v26  ;;  %v1031_v43 = vand.u32 4294901760, %v30_v33  ;;  %s918_s17 = smov 384   ;;  %s919_s18 = smov 24  }
   0xa   :  { %v1007_v31 = vand.u32 4294901760, %v994_v25  ;;  %855 = vmatpush.msra.mxu2 %v964_v9  ;;  %v106_v34 = vand.u32 4294901760, %v105_v27  ;;  %v84_v35 = vsub.f32 %v985_v20, %v1000_v28  ;;  %v123_v37 = vsub.f32 %v979_v17, %v122_v24  ;;  %72 = vmatpush.msra.mxu0 %v964_v9 }
   0xb   :  { %v112_v36 = vand.u32 4294901760, %v111_v29  ;;  %v118_v41 = vand.u32 4294901760, %v117_v30  ;;  %v1037_v46 = vsub.f32 %v33_v23, %v1009_v32  ;;  %v1039_v47 = vand.u32 4294901760, %v27_v39 }
   0xc   :  { %149 = vmatpush.msrb.mxu2 %v103_v12  ;;  %v76_v38 = vsub.f32 %v994_v25, %v1007_v31  ;;  %218 = vmatpush.msrb.mxu0 %v104_v19  ;;  %v1026_v40 = vand.u32 4294901760, %v84_v35  ;;  %v124_v45 = vand.u32 4294901760, %v123_v37  ;;  %v320_v48 = vand.u32 4294901760, %v1029_v42 }
   0xd   :  { %856 = vmatpush.msra.mxu3 %v106_v34  ;;  %107 = vmatpush.msra.mxu1 %v106_v34  ;;  %v1045_v49 = vsub.f32 %v30_v33, %v1031_v43  ;;  %v326_v50 = vand.u32 4294901760, %v1037_v46  ;;  %v1051_v51 = vsub.f32 %v27_v39, %v1039_v47  ;;  %v1063_v55 = vand.u32 4294901760, %v37_v52 }
   0xe   :  { %152 = vmatpush.msrb.mxu2 %v109_v14  ;;  %v1033_v44 = vand.u32 4294901760, %v76_v38  ;;  %222 = vmatpush.msrb.mxu0 %v110_v21  ;;  %v321_v53 = vsub.f32 %v1029_v42, %v320_v48  ;;  %v1080_v61 = vand.u32 4294901760, %v34_v58  ;;  %v1108_v7 = vand.u32 4294901760, %v28_v2 }
   0xf   :  { %86 = vmatmul.f32.vlgmr.msra.gmra.mxu2 %v1026_v40  ;;  %857 = vmatpush.msra.mxu3 %v112_v36  ;;  %v332_v54 = vand.u32 4294901760, %v1045_v49  ;;  %v327_v56 = vsub.f32 %v1037_v46, %v326_v50  ;;  %v338_v57 = vand.u32 4294901760, %v1051_v51  ;;  %v1089_v63 = vsub.f32 %v37_v52, %v1063_v55 }
  0x10   :  { %155 = vmatpush.msrb.mxu2 %v972_v15  ;;  %113 = vmatpush.msra.mxu1 %v112_v36  ;;  %v322_v59 = vand.u32 4294901760, %v321_v53  ;;  %v553_v12 = vsub.f32 %v28_v2, %v1108_v7  ;;  %vm791_vm2 = vcmask 359424   ;;  %vm19_vm3 = vcmask 7168  }
  0x11   :  { %858 = vmatpush.msra.mxu3 %v118_v41  ;;  %78 = vmatmul.f32.vlgmr.msra.gmra.mxu0 %v1033_v44  ;;  %v333_v60 = vsub.f32 %v1045_v49, %v332_v54  ;;  %v328_v0 = vand.u32 4294901760, %v327_v56  ;;  %v339_v1 = vsub.f32 %v1051_v51, %v338_v57  ;;  %v536_v6 = vand.u32 4294901760, %v1089_v63 }
  0x12   :  { %158 = vmatpush.msrb.mxu2 %v979_v17  ;;  %119 = vmatpush.msra.mxu1 %v118_v41  ;;  %v554_v17 = vand.u32 4294901760, %v553_v12 }
  0x13   :  { %859 = vmatpush.msra.mxu3 %v124_v45  ;;  %226 = vmatpush.msrb.mxu0 %v116_v22  ;;  %v340_v8 = vand.u32 4294901760, %v339_v1  ;;  %v537_v11 = vsub.f32 %v1089_v63, %v536_v6 }
  0x14   :  { %282 = vmatpush.msra.mxu2 %v996_v26  ;;  %131 = vmatmul.f32.vlgmr.msra.gmra.mxu3 %v968_v13  ;;  %v555_v22 = vsub.f32 %v553_v12, %v554_v17 }
  0x15   :  { %125 = vmatpush.msra.mxu1 %v124_v45  ;;  %183 = vmatpush.msrb.mxu3 %v949_v3  ;;  %v538_v16 = vand.u32 4294901760, %v537_v11  ;;  %v38_v45 = vld [vmem:[%s1218_s2] sm:$0x7]  ;;  %s917_s2 = smov [#allocation4]  }
  0x16   :  { %127 = vmatmul.f32.vlgmr.msra.gmra.mxu1 %v981_v18  ;;  %284 = vmatpush.msra.mxu2 %v1009_v32  ;;  %v42_v52 = vperm.slane %v38_v45, 2  ;;  %s838_s13 = sshll.u32 %s917_s2, 4  ;;  %s839_s13 = int_to_ptr.vmem [resolvable:$true] %s838_s13 }
  0x17   :  { %253 = vmatpush.msrb.mxu1 %v949_v3  ;;  %161 = vmatmul.f32.vlgmr.msrb.gmra.mxu2 %v994_v25  ;;  %v1099_v3 = vand.u32 4294901760, %v31_v62 }
  0x18   :  { %185 = vmatpush.msrb.mxu3 %v951_v4  ;;  %286 = vmatpush.msra.mxu2 %v1031_v43 }
  0x19   :  { %255 = vmatpush.msrb.mxu1 %v951_v4  ;;  %230 = vmatpush.msrb.mxu0 %v122_v24  ;;  %v334_v4 = vand.u32 4294901760, %v333_v60  ;;  %v556_v24 = vand.u32 4294901760, %v555_v22 }
  0x1a   :  { %187 = vmatpush.msrb.mxu3 %v953_v5  ;;  %232 = vmatmul.f32.vlgmr.msrb.gmra.mxu0 %v981_v18 }
  0x1b   :  { %257 = vmatpush.msrb.mxu1 %v953_v5  ;;  %365 = vmatpush.msra.mxu0 %v1029_v42  ;;  %v1103_v5 = vsub.f32 %v34_v58, %v1080_v61 }
  0x1c   :  { %189 = vmatpush.msrb.mxu3 %v964_v9  ;;  %288 = vmatpush.msra.mxu2 %v1039_v47 }
  0x1d   :  { %193 = vmatmul.f32.vlgmr.msrb.gmra.mxu3 %v1007_v31  ;;  %259 = vmatpush.msrb.mxu1 %v964_v9  ;;  %v547_v9 = vsub.f32 %v31_v62, %v1099_v3  ;;  %v542_v10 = vand.u32 4294901760, %v1103_v5 }
  0x1e   :  { %323 = vmatpush.msra.mxu3 %v322_v59  ;;  %261 = vmatmul.f32.vlgmr.msrb.gmra.mxu1 %v981_v18 }
  0x1f   :  { %166 = vmatmul.f32.gmra.mxu2 %v985_v20  ;;  %399 = vmatpush.msra.mxu1 %v996_v26  ;;  %v548_v14 = vand.u32 4294901760, %v547_v9  ;;  %v543_v15 = vsub.f32 %v1103_v5, %v542_v10 }
  0x20   :  { %329 = vmatpush.msra.mxu3 %v328_v0  ;;  %368 = vmatpush.msra.mxu0 %v1037_v46  ;;  %v40_v46 = vperm.slane %v38_v45, 0 }
  0x21   :  { %434 = vmatpush.msrb.mxu2 %v320_v48  ;;  %401 = vmatpush.msra.mxu1 %v1009_v32  ;;  %v549_v19 = vsub.f32 %v547_v9, %v548_v14  ;;  %v544_v21 = vand.u32 4294901760, %v543_v15 }
  0x22   :  { %335 = vmatpush.msra.mxu3 %v334_v4  ;;  %371 = vmatpush.msra.mxu0 %v1045_v49 }
  0x23   :  { %236 = vmatmul.f32.gmra.mxu0 %v968_v13  ;;  %403 = vmatpush.msra.mxu1 %v1031_v43  ;;  %v550_v23 = vand.u32 4294901760, %v549_v19 }
  0x24   :  { %341 = vmatpush.msra.mxu3 %v340_v8  ;;  %438 = vmatpush.msrb.mxu2 %v326_v50  ;;  %v41_v50 = vperm.slane %v38_v45, 1  ;;  %v914_v45 = vmov -1e+30  }
  0x25   :  { %199 = vmatmul.f32.gmra.mxu3 %v1000_v28  ;;  %374 = vmatpush.msra.mxu0 %v1051_v51  ;;  %20 = vst.msk [vmem:[#allocation2] sm:$0xff] %vm19_vm3, %v914_v45 }
  0x26   :  { %469 = vmatpush.msrb.mxu3 %v996_v26  ;;  %265 = vmatmul.f32.gmra.mxu1 %v968_v13  ;;  %21 = vst.msk [vmem:[#allocation2 + $0x8] sm:$0xff] %vm19_vm3, %v914_v45 }
  0x27   :  { %294 = vmatmul.f32.vlgmr.msra.gmra.mxu2 %v1033_v44  ;;  %405 = vmatpush.msra.mxu1 %v1039_v47 }
  0x28   :  { %471 = vmatpush.msrb.mxu3 %v1009_v32  ;;  %442 = vmatpush.msrb.mxu2 %v332_v54 }
  0x29   :  { %498 = vmatpush.msrb.mxu0 %v1063_v55  ;;  %539 = vmatpush.msrb.mxu1 %v538_v16 }
  0x2a   :  { %473 = vmatpush.msrb.mxu3 %v1031_v43  ;;  %446 = vmatpush.msrb.mxu2 %v338_v57  ;;  %v701_v57 = vlaneseq }
  0x2b   :  { %377 = vmatmul.f32.vlgmr.msra.gmra.mxu0 %v994_v25  ;;  %545 = vmatpush.msrb.mxu1 %v544_v21 }
  0x2c   :  { %475 = vmatpush.msrb.mxu3 %v1039_v47  ;;  %500 = vmatpush.msrb.mxu0 %v1080_v61  ;;  %v702_v62 = vand.u32 127, %v701_v57 }
  0x2d   :  { %343 = vmatmul.f32.vlgmr.msra.gmra.mxu3 %v981_v18  ;;  %581 = vmatpush.msra.mxu2 %v1089_v63 }
  0x2e   :  { %409 = vmatmul.f32.vlgmr.msra.gmra.mxu1 %v1007_v31  ;;  %502 = vmatpush.msrb.mxu0 %v1099_v3  ;;  %v704_v8 = vadd.s32 256, %v702_v62 }
  0x2f   :  { %302 = vmatmul.f32.gmra.mxu2 %v1026_v40  ;;  %615 = vmatpush.msra.mxu3 %v1063_v55 }
  0x30   :  { %551 = vmatpush.msrb.mxu1 %v550_v23  ;;  %584 = vmatpush.msra.mxu2 %v1103_v5  ;;  %vm708_vm1 = vcmp.lt.s32.totalorder %v704_v8, 300 }
  0x31   :  { %504 = vmatpush.msrb.mxu0 %v1108_v7  ;;  %617 = vmatpush.msra.mxu3 %v1080_v61 }
  0x32   :  { %557 = vmatpush.msrb.mxu1 %v556_v24  ;;  %587 = vmatpush.msra.mxu2 %v547_v9 }
  0x33   :  { %382 = vmatmul.f32.gmra.mxu0 %v985_v20  ;;  %619 = vmatpush.msra.mxu3 %v1099_v3 }
  0x34   :  { %650 = vmatpush.msra.mxu0 %v536_v6  ;;  %590 = vmatpush.msra.mxu2 %v553_v12 }
  0x35   :  { %347 = vmatmul.f32.gmra.mxu3 %v968_v13  ;;  %685 = vmatpush.msra.mxu1 %v1063_v55 }
  0x36   :  { %415 = vmatmul.f32.gmra.mxu1 %v1000_v28  ;;  %621 = vmatpush.msra.mxu3 %v1108_v7 }
  0x37   :  { %448 = vmatmul.f32.vlgmr.msrb.gmra.mxu2 %v981_v18  ;;  %654 = vmatpush.msra.mxu0 %v542_v10 }
  0x38   :  { %687 = vmatpush.msra.mxu1 %v1080_v61 }
  0x39   :  { %658 = vmatpush.msra.mxu0 %v548_v14 }
  0x3a   :  { %689 = vmatpush.msra.mxu1 %v1099_v3 }
  0x3b   :  { %510 = vmatmul.f32.vlgmr.msrb.gmra.mxu0 %v1033_v44 }
  0x3c   :  { %662 = vmatpush.msra.mxu0 %v554_v17  ;;  %691 = vmatpush.msra.mxu1 %v1108_v7 }
  0x3d   :  { %477 = vmatmul.f32.vlgmr.msrb.gmra.mxu3 %v981_v18 }
  0x3e   :  { %559 = vmatmul.f32.vlgmr.msrb.gmra.mxu1 %v981_v18 }
  0x3f   :  { %452 = vmatmul.f32.gmra.mxu2 %v968_v13 }
  0x43   :  { %518 = vmatmul.f32.gmra.mxu0 %v1026_v40 }
  0x45   :  { %481 = vmatmul.f32.gmra.mxu3 %v968_v13 }
  0x46   :  { %563 = vmatmul.f32.gmra.mxu1 %v968_v13 }
  0x47   :  { %593 = vmatmul.f32.vlgmr.msra.gmra.mxu2 %v994_v25 }
  0x4b   :  { %664 = vmatmul.f32.vlgmr.msra.gmra.mxu0 %v981_v18 }
  0x4d   :  { %625 = vmatmul.f32.vlgmr.msra.gmra.mxu3 %v1007_v31 }
  0x4e   :  { %693 = vmatmul.f32.vlgmr.msra.gmra.mxu1 %v981_v18 }
  0x4f   :  { %598 = vmatmul.f32.gmra.mxu2 %v985_v20 }
  0x53   :  { %668 = vmatmul.f32.gmra.mxu0 %v968_v13 }
  0x55   :  { %631 = vmatmul.f32.gmra.mxu3 %v1000_v28 }
  0x56   :  { %697 = vmatmul.f32.gmra.mxu1 %v968_v13 }
  0x8e   :  { %v79_v26 = vpop.f32.mrf.mxu0 }
  0x8f   :  { %v80_v48 = vadd.f32 %v79_v26, %v40_v46 }
  0x92   :  { %v87_v27 = vpop.f32.mrf.mxu2 }
  0x93   :  { %v128_v29 = vpop.f32.mrf.mxu1  ;;  %v88_v63 = vadd.f32 %v87_v27, %v40_v46  ;;  %v721_v46 = vld [vmem:[#allocation2] sm:$0xff] }
  0x94   :  { %v129_v53 = vadd.f32 %v128_v29, %v80_v48 }
  0x97   :  { %v132_v30 = vpop.f32.mrf.mxu3  ;;  %v233_v32 = vpop.f32.mrf.mxu0 }
  0x98   :  { %v133_v9 = vadd.f32 %v132_v30, %v88_v63 }
  0x9a   :  { %v162_v25 = vpop.f32.mrf.mxu2 }
  0x9b   :  { %v262_v33 = vpop.f32.mrf.mxu1  ;;  %v163_v59 = vadd.f32 %v162_v25, %v129_v53 }
  0xa0   :  { %v194_v34 = vpop.f32.mrf.mxu3  ;;  %v1170_v35 = vpop.f32.mrf.mxu0 }
  0xa1   :  { %v195_v1 = vadd.f32 %v194_v34, %v163_v59 }
  0xa2   :  { %v167_v31 = vpop.f32.mrf.mxu2 }
  0xa3   :  { %v1172_v18 = vpop.f32.mrf.mxu1  ;;  %v234_v12 = vadd.f32 %v233_v32, %v195_v1  ;;  %v168_v14 = vadd.f32 %v167_v31, %v133_v9 }
  0xa5   :  { %v1177_v23 = vadd.f32 %v262_v33, %v234_v12 }
  0xa8   :  { %v200_v20 = vpop.f32.mrf.mxu3  ;;  %v378_v36 = vpop.f32.mrf.mxu0 }
  0xa9   :  { %v201_v24 = vadd.f32 %v200_v20, %v168_v14 }
  0xaa   :  { %v295_v37 = vpop.f32.mrf.mxu2 }
  0xab   :  { %v410_v38 = vpop.f32.mrf.mxu1  ;;  %v296_v55 = vadd.f32 %v295_v37, %v41_v50  ;;  %v238_v37 = vadd.f32 %v1170_v35, %v201_v24 }
  0xb0   :  { %v344_v28 = vpop.f32.mrf.mxu3  ;;  %v383_v39 = vpop.f32.mrf.mxu0 }
  0xb1   :  { %v345_v61 = vadd.f32 %v344_v28, %v296_v55 }
  0xb2   :  { %v303_v13 = vpop.f32.mrf.mxu2 }
  0xb3   :  { %v416_v40 = vpop.f32.mrf.mxu1  ;;  %v304_v4 = vadd.f32 %v303_v13, %v41_v50  ;;  %v379_v5 = vadd.f32 %v378_v36, %v345_v61  ;;  %v722_v50 = vld [vmem:[#allocation2 + $0x8] sm:$0xff] }
  0xb5   :  { %v411_v16 = vadd.f32 %v410_v38, %v379_v5 }
  0xb8   :  { %v348_v41 = vpop.f32.mrf.mxu3  ;;  %v511_v42 = vpop.f32.mrf.mxu0 }
  0xb9   :  { %v512_v58 = vadd.f32 %v511_v42, %v42_v52  ;;  %v349_v17 = vadd.f32 %v348_v41, %v304_v4  ;;  %v1187_v41 = vadd.f32 %v1172_v18, %v238_v37  ;;  %v915_v18 = vmov 0  }
  0xba   :  { %v449_v43 = vpop.f32.mrf.mxu2  ;;  %866 = vset.pattern.permute.xlu1 %v915_v18  ;;  %867 = vset.pattern.permute.xlu0 %v915_v18 }
  0xbb   :  { %v560_v44 = vpop.f32.mrf.mxu1  ;;  %v450_v26 = vadd.f32 %v449_v43, %v411_v16  ;;  %v384_v30 = vadd.f32 %v383_v39, %v349_v17 }
  0xbc   :  { %v561_v0 = vadd.f32 %v560_v44, %v512_v58 }
  0xbd   :  { %v417_v28 = vadd.f32 %v416_v40, %v384_v30  ;;  %v916_v40 = vmov 0.0  }
  0xbe   :  { %22 = vst.msk [vmem:[#allocation3] sm:$0xff] %vm19_vm3, %v916_v40 }
  0xbf   :  { %23 = vst.msk [vmem:[#allocation3 + $0x8] sm:$0xff] %vm19_vm3, %v916_v40 }
  0xc0   :  { %v478_v47 = vpop.f32.mrf.mxu3  ;;  %v519_v51 = vpop.f32.mrf.mxu0 }
  0xc1   :  { %v520_v10 = vadd.f32 %v519_v51, %v42_v52  ;;  %v1181_v32 = vadd.f32 %v478_v47, %v450_v26 }
  0xc2   :  { %v453_v49 = vpop.f32.mrf.mxu2 }
  0xc3   :  { %v564_v54 = vpop.f32.mrf.mxu1  ;;  %v454_v39 = vadd.f32 %v453_v49, %v417_v28 }
  0xc4   :  { %v565_v21 = vadd.f32 %v564_v54, %v520_v10 }
  0xc8   :  { %v482_v56 = vpop.f32.mrf.mxu3  ;;  %v665_v2 = vpop.f32.mrf.mxu0 }
  0xc9   :  { %v1191_v43 = vadd.f32 %v482_v56, %v454_v39 }
  0xca   :  { %v594_v60 = vpop.f32.mrf.mxu2 }
  0xcb   :  { %v595_v3 = vadd.f32 %v594_v60, %v561_v0  ;;  %v694_v7 = vpop.f32.mrf.mxu1 }
  0xd0   :  { %v626_v6 = vpop.f32.mrf.mxu3  ;;  %v669_v34 = vpop.f32.mrf.mxu0 }
  0xd1   :  { %v627_v11 = vadd.f32 %v626_v6, %v595_v3 }
  0xd2   :  { %v599_v19 = vpop.f32.mrf.mxu2 }
  0xd3   :  { %v666_v15 = vadd.f32 %v665_v2, %v627_v11  ;;  %v600_v27 = vadd.f32 %v599_v19, %v565_v21  ;;  %v698_v38 = vpop.f32.mrf.mxu1  ;;  %v733_v19 = vld [vmem:[#allocation3] sm:$0xff] }
  0xd5   :  { %v695_v22 = vadd.f32 %v694_v7, %v666_v15 }
  0xd7   :  { %v717_v29 = vsel %vm708_vm1, %v695_v22, -1e+30  ;;  %792 = vst.msk [vmem:[#allocation4 + $0x10] sm:$0xff] %vm791_vm2, %v695_v22 }
  0xd8   :  { %v632_v25 = vpop.f32.mrf.mxu3  ;;  %v723_v31 = vmax.f32 %v1177_v23, %v717_v29 }
  0xd9   :  { %v633_v36 = vadd.f32 %v632_v25, %v600_v27  ;;  %v734_v27 = vld [vmem:[#allocation3 + $0x8] sm:$0xff] }
  0xda   :  { %v724_v33 = vmax.f32 %v723_v31, %v1181_v32 }
  0xdb   :  { %v670_v20 = vadd.f32 %v669_v34, %v633_v36 }
  0xdc   :  { %725 = vmax.xlane.f32.xlu0 %v724_v33 }
  0xdd   :  { %v699_v13 = vadd.f32 %v698_v38, %v670_v20 }
  0xdf   :  { %v720_v42 = vsel %vm708_vm1, %v699_v13, -1e+30  ;;  %795 = vst.msk [vmem:[#allocation4 + $0x28] sm:$0xff] %vm791_vm2, %v699_v13 }
  0xe0   :  { %v727_v44 = vmax.f32 %v1187_v41, %v720_v42 }
  0xe2   :  { %v728_v35 = vmax.f32 %v727_v44, %v1191_v43 }
  0xe4   :  { %729 = vmax.xlane.f32.xlu0 %v728_v35 }
  0xe6   :  { %v811_v40 = vld [vmem:[#allocation4 + $0x28] sm:$0xff] }
 0x14f   :  { %v726_v47 = vpop.xlane.xlu0 %725 }
 0x150   :  { %v731_v48 = vmax.f32 %v721_v46, %v726_v47 }
 0x152   :  { %v735_v49 = vsub.f32 %v721_v46, %v731_v48  ;;  %784 = vst.msk [vmem:[#allocation2] sm:$0xff] %vm19_vm3, %v731_v48  ;;  %745 = vperm.xlu1 %866, %v731_v48  }
 0x154   :  { %v737_v15 = vmul.f32 1.442695, %v735_v49 }
 0x157   :  { %v730_v51 = vpop.xlane.xlu0 %729 }
 0x158   :  { %v732_v52 = vmax.f32 %v722_v50, %v730_v51 }
 0x159   :  { %v796_v38 = vld [vmem:[#allocation2] sm:$0xff] }
 0x15a   :  { %v736_v53 = vsub.f32 %v722_v50, %v732_v52  ;;  %785 = vst.msk [vmem:[#allocation2 + $0x8] sm:$0xff] %vm19_vm3, %v732_v52  ;;  %750 = vperm.xlu1 %866, %v732_v52  }
 0x15c   :  { %v739_v16 = vmul.f32 1.442695, %v736_v53 }
 0x161   :  { %v797_v13 = vld [vmem:[#allocation2 + $0x8] sm:$0xff] }
 0x1c4   :  { %v746_v54 = vpop.permute.xlu1 %745 }
 0x1c5   :  { %v753_v55 = vsub.f32 %v1177_v23, %v746_v54  ;;  %v754_v56 = vsub.f32 %v1181_v32, %v746_v54  ;;  %v755_v57 = vsub.f32 %v717_v29, %v746_v54 }
 0x1c7   :  { %v759_v58 = vmul.f32 1.442695, %v753_v55  ;;  %v761_v59 = vmul.f32 1.442695, %v754_v56  ;;  %v763_v60 = vmul.f32 1.442695, %v755_v57 }
 0x1c9   :  { %868 = vpow2.f32 %v759_v58 }
 0x1ca   :  { %870 = vpow2.f32 %v761_v59 }
 0x1cb   :  { %872 = vpow2.f32 %v763_v60 }
 0x1cc   :  { %v751_v61 = vpop.permute.xlu1 %750 }
 0x1cd   :  { %v756_v62 = vsub.f32 %v1187_v41, %v751_v61  ;;  %v757_v63 = vsub.f32 %v1191_v43, %v751_v61  ;;  %v758_v0 = vsub.f32 %v720_v42, %v751_v61  ;;  %v808_v42 = vld [vmem:[#allocation4 + $0x10] sm:$0xff] }
 0x1cf   :  { %v869_v1 = vpop.eup %868  ;;  %v765_v2 = vmul.f32 1.442695, %v756_v62  ;;  %v767_v3 = vmul.f32 1.442695, %v757_v63  ;;  %v769_v5 = vmul.f32 1.442695, %v758_v0 }
 0x1d0   :  { %v871_v4 = vpop.eup %870 }
 0x1d1   :  { %874 = vpow2.f32 %v765_v2  ;;  %v771_v6 = vadd.f32 %v871_v4, %v869_v1  ;;  %v873_v7 = vpop.eup %872 }
 0x1d2   :  { %876 = vpow2.f32 %v767_v3 }
 0x1d3   :  { %v772_v8 = vadd.f32 %v873_v7, %v771_v6  ;;  %878 = vpow2.f32 %v769_v5 }
 0x1d4   :  { %880 = vpow2.f32 %v737_v15 }
 0x1d5   :  { %773 = vadd.xlane.f32.xlu2 %v772_v8  ;;  %882 = vpow2.f32 %v739_v16 }
 0x1d7   :  { %v875_v9 = vpop.eup %874 }
 0x1d8   :  { %v877_v10 = vpop.eup %876 }
 0x1d9   :  { %v775_v11 = vadd.f32 %v877_v10, %v875_v9  ;;  %v879_v12 = vpop.eup %878 }
 0x1da   :  { %v881_v17 = vpop.eup %880 }
 0x1db   :  { %v776_v14 = vadd.f32 %v879_v12, %v775_v11  ;;  %v741_v21 = vmul.f32 %v881_v17, %v733_v19  ;;  %v883_v26 = vpop.eup %882 }
 0x1dc   :  { %v742_v29 = vmul.f32 %v883_v26, %v734_v27 }
 0x1dd   :  { %777 = vadd.xlane.f32.xlu2 %v776_v14 }
 0x248   :  { %v774_v22 = vpop.xlane.xlu2 %773 }
 0x249   :  { %v779_v24 = vadd.f32 %v774_v22, %v741_v21 }
 0x24b   :  { %782 = vst.msk [vmem:[#allocation3] sm:$0xff] %vm19_vm3, %v779_v24 }
 0x250   :  { %v778_v30 = vpop.xlane.xlu2 %777 }
 0x251   :  { %v780_v25 = vadd.f32 %v778_v30, %v742_v29 }
 0x252   :  { %v798_v34 = vld [vmem:[#allocation3] sm:$0xff] }
 0x253   :  { %783 = vst.msk [vmem:[#allocation3 + $0x8] sm:$0xff] %vm19_vm3, %v780_v25  ;;  %884 = vlog2.f32 %v798_v34 }
 0x259   :  { %v885_v31 = vpop.eup %884 }
 0x25a   :  { %v801_v36 = vmul.f32 0.6931472, %v885_v31  ;;  %v799_v37 = vld [vmem:[#allocation3 + $0x8] sm:$0xff] }
 0x25b   :  { %886 = vlog2.f32 %v799_v37 }
 0x25c   :  { %v804_v33 = vadd.f32 %v801_v36, %v796_v38 }
 0x25e   :  { %814 = vperm.xlu0 %867, %v804_v33  }
 0x261   :  { %v887_v20 = vpop.eup %886 }
 0x262   :  { %v803_v28 = vmul.f32 0.6931472, %v887_v20 }
 0x264   :  { %v805_v39 = vadd.f32 %v803_v28, %v797_v13 }
 0x266   :  { %819 = vperm.xlu1 %866, %v805_v39  }
 0x2d0   :  { %v815_v44 = vpop.permute.xlu0 %814 }
 0x2d1   :  { %v822_v35 = vsub.f32 %v1177_v23, %v815_v44  ;;  %v823_v45 = vsub.f32 %v1181_v32, %v815_v44  ;;  %v824_v18 = vsub.f32 %v808_v42, %v815_v44 }
 0x2d3   :  { %828 = vst [vmem:[#allocation4] sm:$0xff] %v822_v35 }
 0x2d4   :  { %829 = vst [vmem:[#allocation4 + $0x8] sm:$0xff] %v823_v45 }
 0x2d5   :  { %830 = vst.msk [vmem:[#allocation4 + $0x10] sm:$0xff] %vm791_vm2, %v824_v18 }
 0x2d8   :  { %v820_v46 = vpop.permute.xlu1 %819 }
 0x2d9   :  { %v825_v47 = vsub.f32 %v1187_v41, %v820_v46  ;;  %v826_v48 = vsub.f32 %v1191_v43, %v820_v46  ;;  %v827_v23 = vsub.f32 %v811_v40, %v820_v46 }
 0x2db   :  { %831 = vst [vmem:[#allocation4 + $0x18] sm:$0xff] %v825_v47 }
 0x2dc   :  { %832 = vst [vmem:[#allocation4 + $0x20] sm:$0xff] %v826_v48 }
 0x2dd   :  { %833 = vst.msk [vmem:[#allocation4 + $0x28] sm:$0xff] %vm791_vm2, %v827_v23 }
 0x2de   :  { %846 = dma.vmem_to_hbm [thread:$0]  %s839_s13, 768, %s841_s16, [#allocation5], %s918_s17, %s918_s17, %s919_s18  }
 0x2df   :  { %912 = dma.done.wait [#allocation5], 768  }
 0x2e0   :  { %913 = vsyncadd [#allocation5], 4294966528 }
 0x2e1   :  { %851 = vsyncpa [#allocation5], 1 }

</bundles_post_ra>
